<compile_context>
chip_gen: v7x
topology: tpu7x:2x2x1
jax: 0.10.0
libtpu: 0.0.40
codegen_flags: <defaults>
</compile_context>

<pallas_src>
import math

import jax
import jax.numpy as jnp
from jax.experimental import pallas as pl
from jax.experimental.pallas import tpu as pltpu


def _round_up(x, m):
    return ((x + m - 1) // m) * m


# ----------------------------------------------------------------------------
# Pallas kernel: whole Qnet forward for one batch tile, everything VMEM-resident.
# ----------------------------------------------------------------------------
def _qnet_kernel(
    x_ref,
    w1_ref, b1_ref, g1_ref, be1_ref,
    w2_ref, b2_ref, g2_ref, be2_ref,
    w3_ref, b3_ref, g3_ref, be3_ref,
    wh_ref, bh_ref,          # fused [advantage_hidden | value_hidden] (noisy, pre-folded)
    wo_ref, bo_ref,          # fused crossed head with dueling-combine folded in
    q_ref,
):
    eps = jnp.float32(1e-5)  # torch.nn.LayerNorm default eps

    def dense(h, w_ref, b_ref):
        # bf16 MXU matmul, f32 accumulate; bias add in f32.
        return jnp.dot(h.astype(jnp.bfloat16), w_ref[...],
                       preferred_element_type=jnp.float32) + b_ref[...]

    def layernorm(h, g_ref, b_ref):
        # One-pass statistics: var = E[x^2] - mu^2 (biased, matches torch).
        inv_n = jnp.float32(1.0 / h.shape[-1])
        mu = jnp.sum(h, axis=-1, keepdims=True) * inv_n
        var = jnp.sum(h * h, axis=-1, keepdims=True) * inv_n - mu * mu
        return (h - mu) * jax.lax.rsqrt(var + eps) * g_ref[...] + b_ref[...]

    h = layernorm(jnp.maximum(dense(x_ref[...], w1_ref, b1_ref), 0.0), g1_ref, be1_ref)
    h = layernorm(jnp.maximum(dense(h, w2_ref, b2_ref), 0.0), g2_ref, be2_ref)
    h = layernorm(jnp.maximum(dense(h, w3_ref, b3_ref), 0.0), g3_ref, be3_ref)

    # Fused head hidden: columns [0:h4] = adv_hid, [h4:2h4] = val_hid (lane-dense).
    hid = jnp.maximum(dense(h, wh_ref, bh_ref), 0.0)

    # Dueling combine (value + adv - mean(adv)) is pre-folded into (wo, bo) at
    # pack time, so this single lane-dense MXU matmul writes Q directly.
    # Only the first `action_dim` lanes are meaningful; wrapper slices them.
    q_ref[...] = dense(hid, wo_ref, bo_ref)


# ----------------------------------------------------------------------------
# Parameter construction (mirrors PyTorch Qnet.__init__ / NoisyLinear).
# ----------------------------------------------------------------------------
def _scale_noise(key, size):
    x = jax.random.normal(key, (size,), jnp.float32)
    return jnp.sign(x) * jnp.sqrt(jnp.abs(x))


def _linear_init(key, in_f, out_f):
    kw, kb = jax.random.split(key)
    bound = 1.0 / math.sqrt(in_f)
    w = jax.random.uniform(kw, (out_f, in_f), jnp.float32, -bound, bound)
    b = jax.random.uniform(kb, (out_f,), jnp.float32, -bound, bound)
    return w, b


def _noisy_init(key, in_f, out_f, std_init=0.5):
    kw, kb, kin, kout = jax.random.split(key, 4)
    mu_range = 1.0 / math.sqrt(in_f)
    w_mu = jax.random.uniform(kw, (out_f, in_f), jnp.float32, -mu_range, mu_range)
    w_sigma = jnp.full((out_f, in_f), std_init / math.sqrt(in_f), jnp.float32)
    b_mu = jax.random.uniform(kb, (out_f,), jnp.float32, -mu_range, mu_range)
    b_sigma = jnp.full((out_f,), std_init / math.sqrt(out_f), jnp.float32)
    eps_in = _scale_noise(kin, in_f)
    eps_out = _scale_noise(kout, out_f)
    return dict(w_mu=w_mu, w_sigma=w_sigma, w_eps=jnp.outer(eps_out, eps_in),
                b_mu=b_mu, b_sigma=b_sigma, b_eps=eps_out)


def make_qnet_params(key, input_dim, action_dim):
    hidden = 2 ** (int(math.log2(input_dim)) + 5)
    h4 = hidden // 4
    ks = jax.random.split(key, 7)
    fc1_w, fc1_b = _linear_init(ks[0], input_dim, hidden)
    fc2_w, fc2_b = _linear_init(ks[1], hidden, h4)
    fc3_w, fc3_b = _linear_init(ks[2], h4, h4)
    ones = lambda n: jnp.ones((n,), jnp.float32)
    zeros = lambda n: jnp.zeros((n,), jnp.float32)
    return dict(
        fc1_w=fc1_w, fc1_b=fc1_b, ln1_g=ones(hidden), ln1_b=zeros(hidden),
        fc2_w=fc2_w, fc2_b=fc2_b, ln2_g=ones(h4), ln2_b=zeros(h4),
        fc3_w=fc3_w, fc3_b=fc3_b, ln3_g=ones(h4), ln3_b=zeros(h4),
        ah=_noisy_init(ks[3], h4, h4),          # advantage_hidden_layer
        a=_noisy_init(ks[4], h4, action_dim),   # advantage_layer
        vh=_noisy_init(ks[5], h4, h4),          # value_hidden_layer
        v=_noisy_init(ks[6], h4, 1),            # value_layer
    )


def _fold_noisy(n):
    """NoisyLinear.forward's effective weight/bias (mu + sigma * epsilon)."""
    return (n["w_mu"] + n["w_sigma"] * n["w_eps"],
            n["b_mu"] + n["b_sigma"] * n["b_eps"])


def _pack_params(p):
    """Fold noise, fuse heads, and fold the dueling combine into the head weights."""
    f32, bf16 = jnp.float32, jnp.bfloat16
    row = lambda v: v.reshape(1, -1).astype(f32)

    wah, bah = _fold_noisy(p["ah"])
    wvh, bvh = _fold_noisy(p["vh"])
    wa, ba = _fold_noisy(p["a"])
    wv, bv = _fold_noisy(p["v"])

    h4 = wah.shape[0]
    a_dim = wa.shape[0]
    n_out = _round_up(max(a_dim + 1, 128), 128)

    # Fused head hidden weight: [adv_hid | val_hid] columns.
    wh = jnp.concatenate([wah.T, wvh.T], axis=1)            # (h4, 2*h4)
    bh = jnp.concatenate([bah, bvh]).reshape(1, -1)         # (1, 2*h4)

    # Fused crossed output head (block layout preserves the crossed wiring):
    #   value     = adv_hid @ wv.T  -> rows [0:h4],   column a_dim
    #   advantage = val_hid @ wa.T  -> rows [h4:2h4], columns [0:a_dim]
    wo = jnp.zeros((2 * h4, n_out), f32)
    wo = wo.at[h4:, :a_dim].set(wa.T)
    wo = wo.at[:h4, a_dim:a_dim + 1].set(wv.T)
    bo = jnp.zeros((1, n_out), f32)
    bo = bo.at[0, :a_dim].set(ba)
    bo = bo.at[0, a_dim].set(bv[0])

    # Fold the dueling combine  q_j = adv_j + value - mean(adv)  into the head:
    #   q = y @ T   with   T = I + e_{a_dim} 1^T - (1/A) * (sum_{k<A} e_k) 1^T
    # so wo_q = wo @ T, bo_q = bo @ T and the kernel's final matmul yields Q.
    T = jnp.eye(n_out, dtype=f32)
    T = T.at[a_dim, :].add(1.0)
    T = T.at[:a_dim, :].add(-1.0 / a_dim)
    wo_q = wo @ T
    bo_q = bo @ T

    return dict(
        w1=p["fc1_w"].T.astype(bf16), b1=row(p["fc1_b"]),
        g1=row(p["ln1_g"]), be1=row(p["ln1_b"]),
        w2=p["fc2_w"].T.astype(bf16), b2=row(p["fc2_b"]),
        g2=row(p["ln2_g"]), be2=row(p["ln2_b"]),
        w3=p["fc3_w"].T.astype(bf16), b3=row(p["fc3_b"]),
        g3=row(p["ln3_g"]), be3=row(p["ln3_b"]),
        wh=wh.astype(bf16), bh=bh,
        wo=wo_q.astype(bf16), bo=bo_q,
    )


# ----------------------------------------------------------------------------
# Jitted forward: noise fold + packing + pallas_call in one dispatch.
# ----------------------------------------------------------------------------
@jax.jit
def qnet_forward(x, params):
    packed = _pack_params(params)
    action_dim = params["a"]["w_mu"].shape[0]
    n_out = packed["wo"].shape[1]
    batch, in_dim = x.shape

    # Batch tiling: pad to a multiple of 8 rows, tile at <=512 rows per grid step.
    b8 = _round_up(max(batch, 8), 8)
    tile_b = min(512, b8)
    bp = _round_up(b8, tile_b)
    x_pad = jnp.pad(x.astype(jnp.float32), ((0, bp - batch), (0, 0)))

    operands = (
        x_pad,
        packed["w1"], packed["b1"], packed["g1"], packed["be1"],
        packed["w2"], packed["b2"], packed["g2"], packed["be2"],
        packed["w3"], packed["b3"], packed["g3"], packed["be3"],
        packed["wh"], packed["bh"], packed["wo"], packed["bo"],
    )

    def resident(a):
        nd = a.ndim
        return pl.BlockSpec(a.shape, lambda i, _nd=nd: (0,) * _nd)

    in_specs = ([pl.BlockSpec((tile_b, in_dim), lambda i: (i, 0))]
                + [resident(a) for a in operands[1:]])

    q_pad = pl.pallas_call(
        _qnet_kernel,
        out_shape=jax.ShapeDtypeStruct((bp, n_out), jnp.float32),
        grid=(bp // tile_b,),
        in_specs=in_specs,
        out_specs=pl.BlockSpec((tile_b, n_out), lambda i: (i, 0)),
        compiler_params=pltpu.CompilerParams(dimension_semantics=("parallel",)),
    )(*operands)

    return q_pad[:batch, :action_dim]


# ----------------------------------------------------------------------------
# References for correctness checks.
# ----------------------------------------------------------------------------
def qnet_forward_ref_f32(x, p):
    """Pure f32 reference, faithful to the PyTorch module."""
    def ln(h, g, b):
        mu = jnp.mean(h, -1, keepdims=True)
        var = jnp.mean((h - mu) ** 2, -1, keepdims=True)
        return (h - mu) / jnp.sqrt(var + 1e-5) * g + b

    h = ln(jax.nn.relu(x @ p["fc1_w"].T + p["fc1_b"]), p["ln1_g"], p["ln1_b"])
    h = ln(jax.nn.relu(h @ p["fc2_w"].T + p["fc2_b"]), p["ln2_g"], p["ln2_b"])
    h = ln(jax.nn.relu(h @ p["fc3_w"].T + p["fc3_b"]), p["ln3_g"], p["ln3_b"])
    wah, bah = _fold_noisy(p["ah"]); wvh, bvh = _fold_noisy(p["vh"])
    wa, ba = _fold_noisy(p["a"]); wv, bv = _fold_noisy(p["v"])
    adv_hid = jax.nn.relu(h @ wah.T + bah)
    val_hid = jax.nn.relu(h @ wvh.T + bvh)
    value = adv_hid @ wv.T + bv            # NOTE: crossed wiring, as in the source
    advantage = val_hid @ wa.T + ba
    return value + advantage - jnp.mean(advantage, -1, keepdims=True)


def qnet_forward_ref_bf16(x, packed, action_dim):
    """Reference with the same packed weights / bf16 matmul numerics as the kernel."""
    def dense(h, w, b):
        return jnp.dot(h.astype(jnp.bfloat16), w, preferred_element_type=jnp.float32) + b

    def ln(h, g, b):
        n = h.shape[-1]
        mu = jnp.sum(h, -1, keepdims=True) / n
        var = jnp.sum(h * h, -1, keepdims=True) / n - mu * mu
        return (h - mu) * jax.lax.rsqrt(var + jnp.float32(1e-5)) * g + b

    h = ln(jax.nn.relu(dense(x, packed["w1"], packed["b1"])), packed["g1"], packed["be1"])
    h = ln(jax.nn.relu(dense(h, packed["w2"], packed["b2"])), packed["g2"], packed["be2"])
    h = ln(jax.nn.relu(dense(h, packed["w3"], packed["b3"])), packed["g3"], packed["be3"])
    hid = jax.nn.relu(dense(h, packed["wh"], packed["bh"]))
    q = dense(hid, packed["wo"], packed["bo"])
    return q[:, :action_dim]


if __name__ == "__main__":
    batch, input_dim, action_dim = 8, 8, 4   # hidden = 2**(3+5) = 256, h4 = 64

    key = jax.random.PRNGKey(0)
    kx, kp = jax.random.split(key)
    x = jax.random.normal(kx, (batch, input_dim), dtype=jnp.float32)
    params = make_qnet_params(kp, input_dim, action_dim)

    q = jax.block_until_ready(qnet_forward(x, params))
    assert q.shape == (batch, action_dim)

    # Tight check against a reference with identical packed weights / bf16 numerics.
    packed = _pack_params(params)
    q_bf16 = qnet_forward_ref_bf16(x, packed, action_dim)
    assert jnp.allclose(q, q_bf16, atol=5e-3, rtol=5e-3), "mismatch vs bf16 reference"

    # Loose check against the exact f32 PyTorch-equivalent math.
    q_f32 = qnet_forward_ref_f32(x, params)
    assert jnp.allclose(q, q_f32, atol=5e-2, rtol=5e-2), "mismatch vs f32 reference"

    print("KERNEL_OK")
</pallas_src>

<mosaic_0001>
module attributes {stable_mosaic.version = 11 : i64} {
  func.func @_qnet_kernel(%arg0: i32, %arg1: memref<8x8xf32, #tpu.memory_space<vmem>>, %arg2: memref<8x256xbf16, #tpu.memory_space<vmem>>, %arg3: memref<1x256xf32, #tpu.memory_space<vmem>>, %arg4: memref<1x256xf32, #tpu.memory_space<vmem>>, %arg5: memref<1x256xf32, #tpu.memory_space<vmem>>, %arg6: memref<256x64xbf16, #tpu.memory_space<vmem>>, %arg7: memref<1x64xf32, #tpu.memory_space<vmem>>, %arg8: memref<1x64xf32, #tpu.memory_space<vmem>>, %arg9: memref<1x64xf32, #tpu.memory_space<vmem>>, %arg10: memref<64x64xbf16, #tpu.memory_space<vmem>>, %arg11: memref<1x64xf32, #tpu.memory_space<vmem>>, %arg12: memref<1x64xf32, #tpu.memory_space<vmem>>, %arg13: memref<1x64xf32, #tpu.memory_space<vmem>>, %arg14: memref<64x128xbf16, #tpu.memory_space<vmem>>, %arg15: memref<1x128xf32, #tpu.memory_space<vmem>>, %arg16: memref<128x128xbf16, #tpu.memory_space<vmem>>, %arg17: memref<1x128xf32, #tpu.memory_space<vmem>>, %arg18: memref<8x128xf32, #tpu.memory_space<vmem>>) attributes {dimension_semantics = [#tpu.dimension_semantics<parallel>], iteration_bounds = array<i64: 1>, scalar_prefetch = 0 : i64, scratch_operands = 0 : i64, tpu.core_type = #tpu.core_type<tc>, window_params = [{transform_indices = @transform_0, window_bounds = array<i64: 8, 8>}, {pipeline_mode = #tpu.pipeline_mode<synchronous>, transform_indices = @transform_1, window_bounds = array<i64: 8, 256>}, {pipeline_mode = #tpu.pipeline_mode<synchronous>, transform_indices = @transform_2, window_bounds = array<i64: 1, 256>}, {pipeline_mode = #tpu.pipeline_mode<synchronous>, transform_indices = @transform_3, window_bounds = array<i64: 1, 256>}, {pipeline_mode = #tpu.pipeline_mode<synchronous>, transform_indices = @transform_4, window_bounds = array<i64: 1, 256>}, {pipeline_mode = #tpu.pipeline_mode<synchronous>, transform_indices = @transform_5, window_bounds = array<i64: 256, 64>}, {pipeline_mode = #tpu.pipeline_mode<synchronous>, transform_indices = @transform_6, window_bounds = array<i64: 1, 64>}, {pipeline_mode = #tpu.pipeline_mode<synchronous>, transform_indices = @transform_7, window_bounds = array<i64: 1, 64>}, {pipeline_mode = #tpu.pipeline_mode<synchronous>, transform_indices = @transform_8, window_bounds = array<i64: 1, 64>}, {pipeline_mode = #tpu.pipeline_mode<synchronous>, transform_indices = @transform_9, window_bounds = array<i64: 64, 64>}, {pipeline_mode = #tpu.pipeline_mode<synchronous>, transform_indices = @transform_10, window_bounds = array<i64: 1, 64>}, {pipeline_mode = #tpu.pipeline_mode<synchronous>, transform_indices = @transform_11, window_bounds = array<i64: 1, 64>}, {pipeline_mode = #tpu.pipeline_mode<synchronous>, transform_indices = @transform_12, window_bounds = array<i64: 1, 64>}, {pipeline_mode = #tpu.pipeline_mode<synchronous>, transform_indices = @transform_13, window_bounds = array<i64: 64, 128>}, {pipeline_mode = #tpu.pipeline_mode<synchronous>, transform_indices = @transform_14, window_bounds = array<i64: 1, 128>}, {pipeline_mode = #tpu.pipeline_mode<synchronous>, transform_indices = @transform_15, window_bounds = array<i64: 128, 128>}, {pipeline_mode = #tpu.pipeline_mode<synchronous>, transform_indices = @transform_16, window_bounds = array<i64: 1, 128>}, {transform_indices = @transform_17, window_bounds = array<i64: 8, 128>}]} {
    %c0 = arith.constant 0 : index
    %c0_0 = arith.constant 0 : index
    %0 = vector.load %arg1[%c0, %c0_0] : memref<8x8xf32, #tpu.memory_space<vmem>>, vector<8x8xf32>
    %1 = arith.truncf %0 : vector<8x8xf32> to vector<8x8xbf16>
    %c0_1 = arith.constant 0 : index
    %c0_2 = arith.constant 0 : index
    %2 = vector.load %arg2[%c0_1, %c0_2] : memref<8x256xbf16, #tpu.memory_space<vmem>>, vector<8x256xbf16>
    %cst = arith.constant dense<0.000000e+00> : vector<8x256xf32>
    %3 = tpu.matmul %1, %2, %cst {dimension_numbers = #tpu.dot_dimension_numbers<[1], [0], [0], [1], [0, 0, 1, 1], [], []>} : vector<8x8xbf16>, vector<8x256xbf16>, vector<8x256xf32> -> vector<8x256xf32>
    %c0_3 = arith.constant 0 : index
    %c0_4 = arith.constant 0 : index
    %4 = vector.load %arg3[%c0_3, %c0_4] : memref<1x256xf32, #tpu.memory_space<vmem>>, vector<1x256xf32>
    %5 = vector.broadcast %4 : vector<1x256xf32> to vector<8x256xf32>
    %6 = arith.addf %3, %5 : vector<8x256xf32>
    %cst_5 = arith.constant 0.000000e+00 : f32
    %7 = vector.broadcast %cst_5 : f32 to vector<8x256xf32>
    %8 = arith.maximumf %6, %7 : vector<8x256xf32>
    %cst_6 = arith.constant dense<0.000000e+00> : vector<8xf32>
    %9 = vector.multi_reduction <add>, %8, %cst_6 [1] : vector<8x256xf32> to vector<8xf32>
    %10 = vector.shape_cast %9 : vector<8xf32> to vector<8x1xf32>
    %cst_7 = arith.constant 3.906250e-03 : f32
    %11 = vector.broadcast %cst_7 : f32 to vector<8x1xf32>
    %12 = arith.mulf %10, %11 : vector<8x1xf32>
    %13 = arith.mulf %8, %8 : vector<8x256xf32>
    %cst_8 = arith.constant dense<0.000000e+00> : vector<8xf32>
    %14 = vector.multi_reduction <add>, %13, %cst_8 [1] : vector<8x256xf32> to vector<8xf32>
    %15 = vector.shape_cast %14 : vector<8xf32> to vector<8x1xf32>
    %cst_9 = arith.constant 3.906250e-03 : f32
    %16 = vector.broadcast %cst_9 : f32 to vector<8x1xf32>
    %17 = arith.mulf %15, %16 : vector<8x1xf32>
    %18 = arith.mulf %12, %12 : vector<8x1xf32>
    %19 = arith.subf %17, %18 : vector<8x1xf32>
    %20 = vector.broadcast %12 : vector<8x1xf32> to vector<8x256xf32>
    %21 = arith.subf %8, %20 : vector<8x256xf32>
    %cst_10 = arith.constant 9.99999974E-6 : f32
    %22 = vector.broadcast %cst_10 : f32 to vector<8x1xf32>
    %23 = arith.addf %19, %22 : vector<8x1xf32>
    %24 = math.rsqrt %23 : vector<8x1xf32>
    %25 = vector.broadcast %24 : vector<8x1xf32> to vector<8x256xf32>
    %26 = arith.mulf %21, %25 : vector<8x256xf32>
    %c0_11 = arith.constant 0 : index
    %c0_12 = arith.constant 0 : index
    %27 = vector.load %arg4[%c0_11, %c0_12] : memref<1x256xf32, #tpu.memory_space<vmem>>, vector<1x256xf32>
    %28 = vector.broadcast %27 : vector<1x256xf32> to vector<8x256xf32>
    %29 = arith.mulf %26, %28 : vector<8x256xf32>
    %c0_13 = arith.constant 0 : index
    %c0_14 = arith.constant 0 : index
    %30 = vector.load %arg5[%c0_13, %c0_14] : memref<1x256xf32, #tpu.memory_space<vmem>>, vector<1x256xf32>
    %31 = vector.broadcast %30 : vector<1x256xf32> to vector<8x256xf32>
    %32 = arith.addf %29, %31 : vector<8x256xf32>
    %33 = arith.truncf %32 : vector<8x256xf32> to vector<8x256xbf16>
    %c0_15 = arith.constant 0 : index
    %c0_16 = arith.constant 0 : index
    %34 = vector.load %arg6[%c0_15, %c0_16] : memref<256x64xbf16, #tpu.memory_space<vmem>>, vector<256x64xbf16>
    %cst_17 = arith.constant dense<0.000000e+00> : vector<8x64xf32>
    %35 = tpu.matmul %33, %34, %cst_17 {dimension_numbers = #tpu.dot_dimension_numbers<[1], [0], [0], [1], [0, 0, 1, 1], [], []>} : vector<8x256xbf16>, vector<256x64xbf16>, vector<8x64xf32> -> vector<8x64xf32>
    %c0_18 = arith.constant 0 : index
    %c0_19 = arith.constant 0 : index
    %36 = vector.load %arg7[%c0_18, %c0_19] : memref<1x64xf32, #tpu.memory_space<vmem>>, vector<1x64xf32>
    %37 = vector.broadcast %36 : vector<1x64xf32> to vector<8x64xf32>
    %38 = arith.addf %35, %37 : vector<8x64xf32>
    %cst_20 = arith.constant 0.000000e+00 : f32
    %39 = vector.broadcast %cst_20 : f32 to vector<8x64xf32>
    %40 = arith.maximumf %38, %39 : vector<8x64xf32>
    %cst_21 = arith.constant dense<0.000000e+00> : vector<8xf32>
    %41 = vector.multi_reduction <add>, %40, %cst_21 [1] : vector<8x64xf32> to vector<8xf32>
    %42 = vector.shape_cast %41 : vector<8xf32> to vector<8x1xf32>
    %cst_22 = arith.constant 1.562500e-02 : f32
    %43 = vector.broadcast %cst_22 : f32 to vector<8x1xf32>
    %44 = arith.mulf %42, %43 : vector<8x1xf32>
    %45 = arith.mulf %40, %40 : vector<8x64xf32>
    %cst_23 = arith.constant dense<0.000000e+00> : vector<8xf32>
    %46 = vector.multi_reduction <add>, %45, %cst_23 [1] : vector<8x64xf32> to vector<8xf32>
    %47 = vector.shape_cast %46 : vector<8xf32> to vector<8x1xf32>
    %cst_24 = arith.constant 1.562500e-02 : f32
    %48 = vector.broadcast %cst_24 : f32 to vector<8x1xf32>
    %49 = arith.mulf %47, %48 : vector<8x1xf32>
    %50 = arith.mulf %44, %44 : vector<8x1xf32>
    %51 = arith.subf %49, %50 : vector<8x1xf32>
    %52 = vector.broadcast %44 : vector<8x1xf32> to vector<8x64xf32>
    %53 = arith.subf %40, %52 : vector<8x64xf32>
    %cst_25 = arith.constant 9.99999974E-6 : f32
    %54 = vector.broadcast %cst_25 : f32 to vector<8x1xf32>
    %55 = arith.addf %51, %54 : vector<8x1xf32>
    %56 = math.rsqrt %55 : vector<8x1xf32>
    %57 = vector.broadcast %56 : vector<8x1xf32> to vector<8x64xf32>
    %58 = arith.mulf %53, %57 : vector<8x64xf32>
    %c0_26 = arith.constant 0 : index
    %c0_27 = arith.constant 0 : index
    %59 = vector.load %arg8[%c0_26, %c0_27] : memref<1x64xf32, #tpu.memory_space<vmem>>, vector<1x64xf32>
    %60 = vector.broadcast %59 : vector<1x64xf32> to vector<8x64xf32>
    %61 = arith.mulf %58, %60 : vector<8x64xf32>
    %c0_28 = arith.constant 0 : index
    %c0_29 = arith.constant 0 : index
    %62 = vector.load %arg9[%c0_28, %c0_29] : memref<1x64xf32, #tpu.memory_space<vmem>>, vector<1x64xf32>
    %63 = vector.broadcast %62 : vector<1x64xf32> to vector<8x64xf32>
    %64 = arith.addf %61, %63 : vector<8x64xf32>
    %65 = arith.truncf %64 : vector<8x64xf32> to vector<8x64xbf16>
    %c0_30 = arith.constant 0 : index
    %c0_31 = arith.constant 0 : index
    %66 = vector.load %arg10[%c0_30, %c0_31] : memref<64x64xbf16, #tpu.memory_space<vmem>>, vector<64x64xbf16>
    %cst_32 = arith.constant dense<0.000000e+00> : vector<8x64xf32>
    %67 = tpu.matmul %65, %66, %cst_32 {dimension_numbers = #tpu.dot_dimension_numbers<[1], [0], [0], [1], [0, 0, 1, 1], [], []>} : vector<8x64xbf16>, vector<64x64xbf16>, vector<8x64xf32> -> vector<8x64xf32>
    %c0_33 = arith.constant 0 : index
    %c0_34 = arith.constant 0 : index
    %68 = vector.load %arg11[%c0_33, %c0_34] : memref<1x64xf32, #tpu.memory_space<vmem>>, vector<1x64xf32>
    %69 = vector.broadcast %68 : vector<1x64xf32> to vector<8x64xf32>
    %70 = arith.addf %67, %69 : vector<8x64xf32>
    %cst_35 = arith.constant 0.000000e+00 : f32
    %71 = vector.broadcast %cst_35 : f32 to vector<8x64xf32>
    %72 = arith.maximumf %70, %71 : vector<8x64xf32>
    %cst_36 = arith.constant dense<0.000000e+00> : vector<8xf32>
    %73 = vector.multi_reduction <add>, %72, %cst_36 [1] : vector<8x64xf32> to vector<8xf32>
    %74 = vector.shape_cast %73 : vector<8xf32> to vector<8x1xf32>
    %cst_37 = arith.constant 1.562500e-02 : f32
    %75 = vector.broadcast %cst_37 : f32 to vector<8x1xf32>
    %76 = arith.mulf %74, %75 : vector<8x1xf32>
    %77 = arith.mulf %72, %72 : vector<8x64xf32>
    %cst_38 = arith.constant dense<0.000000e+00> : vector<8xf32>
    %78 = vector.multi_reduction <add>, %77, %cst_38 [1] : vector<8x64xf32> to vector<8xf32>
    %79 = vector.shape_cast %78 : vector<8xf32> to vector<8x1xf32>
    %cst_39 = arith.constant 1.562500e-02 : f32
    %80 = vector.broadcast %cst_39 : f32 to vector<8x1xf32>
    %81 = arith.mulf %79, %80 : vector<8x1xf32>
    %82 = arith.mulf %76, %76 : vector<8x1xf32>
    %83 = arith.subf %81, %82 : vector<8x1xf32>
    %84 = vector.broadcast %76 : vector<8x1xf32> to vector<8x64xf32>
    %85 = arith.subf %72, %84 : vector<8x64xf32>
    %cst_40 = arith.constant 9.99999974E-6 : f32
    %86 = vector.broadcast %cst_40 : f32 to vector<8x1xf32>
    %87 = arith.addf %83, %86 : vector<8x1xf32>
    %88 = math.rsqrt %87 : vector<8x1xf32>
    %89 = vector.broadcast %88 : vector<8x1xf32> to vector<8x64xf32>
    %90 = arith.mulf %85, %89 : vector<8x64xf32>
    %c0_41 = arith.constant 0 : index
    %c0_42 = arith.constant 0 : index
    %91 = vector.load %arg12[%c0_41, %c0_42] : memref<1x64xf32, #tpu.memory_space<vmem>>, vector<1x64xf32>
    %92 = vector.broadcast %91 : vector<1x64xf32> to vector<8x64xf32>
    %93 = arith.mulf %90, %92 : vector<8x64xf32>
    %c0_43 = arith.constant 0 : index
    %c0_44 = arith.constant 0 : index
    %94 = vector.load %arg13[%c0_43, %c0_44] : memref<1x64xf32, #tpu.memory_space<vmem>>, vector<1x64xf32>
    %95 = vector.broadcast %94 : vector<1x64xf32> to vector<8x64xf32>
    %96 = arith.addf %93, %95 : vector<8x64xf32>
    %97 = arith.truncf %96 : vector<8x64xf32> to vector<8x64xbf16>
    %c0_45 = arith.constant 0 : index
    %c0_46 = arith.constant 0 : index
    %98 = vector.load %arg14[%c0_45, %c0_46] : memref<64x128xbf16, #tpu.memory_space<vmem>>, vector<64x128xbf16>
    %cst_47 = arith.constant dense<0.000000e+00> : vector<8x128xf32>
    %99 = tpu.matmul %97, %98, %cst_47 {dimension_numbers = #tpu.dot_dimension_numbers<[1], [0], [0], [1], [0, 0, 1, 1], [], []>} : vector<8x64xbf16>, vector<64x128xbf16>, vector<8x128xf32> -> vector<8x128xf32>
    %c0_48 = arith.constant 0 : index
    %c0_49 = arith.constant 0 : index
    %100 = vector.load %arg15[%c0_48, %c0_49] : memref<1x128xf32, #tpu.memory_space<vmem>>, vector<1x128xf32>
    %101 = vector.broadcast %100 : vector<1x128xf32> to vector<8x128xf32>
    %102 = arith.addf %99, %101 : vector<8x128xf32>
    %cst_50 = arith.constant 0.000000e+00 : f32
    %103 = vector.broadcast %cst_50 : f32 to vector<8x128xf32>
    %104 = arith.maximumf %102, %103 : vector<8x128xf32>
    %105 = arith.truncf %104 : vector<8x128xf32> to vector<8x128xbf16>
    %c0_51 = arith.constant 0 : index
    %c0_52 = arith.constant 0 : index
    %106 = vector.load %arg16[%c0_51, %c0_52] : memref<128x128xbf16, #tpu.memory_space<vmem>>, vector<128x128xbf16>
    %cst_53 = arith.constant dense<0.000000e+00> : vector<8x128xf32>
    %107 = tpu.matmul %105, %106, %cst_53 {dimension_numbers = #tpu.dot_dimension_numbers<[1], [0], [0], [1], [0, 0, 1, 1], [], []>} : vector<8x128xbf16>, vector<128x128xbf16>, vector<8x128xf32> -> vector<8x128xf32>
    %c0_54 = arith.constant 0 : index
    %c0_55 = arith.constant 0 : index
    %108 = vector.load %arg17[%c0_54, %c0_55] : memref<1x128xf32, #tpu.memory_space<vmem>>, vector<1x128xf32>
    %109 = vector.broadcast %108 : vector<1x128xf32> to vector<8x128xf32>
    %110 = arith.addf %107, %109 : vector<8x128xf32>
    %c0_56 = arith.constant 0 : index
    %c0_57 = arith.constant 0 : index
    %111 = vector.load %arg18[%c0_56, %c0_57] : memref<8x128xf32, #tpu.memory_space<vmem>>, vector<8x128xf32>
    tpu.vector_store %arg18[%c0_56, %c0_57], %110 {strides = array<i32>} : memref<8x128xf32, #tpu.memory_space<vmem>>, vector<8x128xf32>,
    return
  }
  func.func @transform_0(%arg0: i32) -> (i32, i32) {
    %c0_i32 = arith.constant 0 : i32
    %c0_i32_0 = arith.constant 0 : i32
    return %arg0, %c0_i32 : i32, i32
  }
  func.func @transform_1(%arg0: i32) -> (i32, i32) {
    %c0_i32 = arith.constant 0 : i32
    %c0_i32_0 = arith.constant 0 : i32
    %c0_i32_1 = arith.constant 0 : i32
    return %c0_i32, %c0_i32_0 : i32, i32
  }
  func.func @transform_2(%arg0: i32) -> (i32, i32) {
    %c0_i32 = arith.constant 0 : i32
    %c0_i32_0 = arith.constant 0 : i32
    %c0_i32_1 = arith.constant 0 : i32
    return %c0_i32, %c0_i32_0 : i32, i32
  }
  func.func @transform_3(%arg0: i32) -> (i32, i32) {
    %c0_i32 = arith.constant 0 : i32
    %c0_i32_0 = arith.constant 0 : i32
    %c0_i32_1 = arith.constant 0 : i32
    return %c0_i32, %c0_i32_0 : i32, i32
  }
  func.func @transform_4(%arg0: i32) -> (i32, i32) {
    %c0_i32 = arith.constant 0 : i32
    %c0_i32_0 = arith.constant 0 : i32
    %c0_i32_1 = arith.constant 0 : i32
    return %c0_i32, %c0_i32_0 : i32, i32
  }
  func.func @transform_5(%arg0: i32) -> (i32, i32) {
    %c0_i32 = arith.constant 0 : i32
    %c0_i32_0 = arith.constant 0 : i32
    %c0_i32_1 = arith.constant 0 : i32
    return %c0_i32, %c0_i32_0 : i32, i32
  }
  func.func @transform_6(%arg0: i32) -> (i32, i32) {
    %c0_i32 = arith.constant 0 : i32
    %c0_i32_0 = arith.constant 0 : i32
    %c0_i32_1 = arith.constant 0 : i32
    return %c0_i32, %c0_i32_0 : i32, i32
  }
  func.func @transform_7(%arg0: i32) -> (i32, i32) {
    %c0_i32 = arith.constant 0 : i32
    %c0_i32_0 = arith.constant 0 : i32
    %c0_i32_1 = arith.constant 0 : i32
    return %c0_i32, %c0_i32_0 : i32, i32
  }
  func.func @transform_8(%arg0: i32) -> (i32, i32) {
    %c0_i32 = arith.constant 0 : i32
    %c0_i32_0 = arith.constant 0 : i32
    %c0_i32_1 = arith.constant 0 : i32
    return %c0_i32, %c0_i32_0 : i32, i32
  }
  func.func @transform_9(%arg0: i32) -> (i32, i32) {
    %c0_i32 = arith.constant 0 : i32
    %c0_i32_0 = arith.constant 0 : i32
    %c0_i32_1 = arith.constant 0 : i32
    return %c0_i32, %c0_i32_0 : i32, i32
  }
  func.func @transform_10(%arg0: i32) -> (i32, i32) {
    %c0_i32 = arith.constant 0 : i32
    %c0_i32_0 = arith.constant 0 : i32
    %c0_i32_1 = arith.constant 0 : i32
    return %c0_i32, %c0_i32_0 : i32, i32
  }
  func.func @transform_11(%arg0: i32) -> (i32, i32) {
    %c0_i32 = arith.constant 0 : i32
    %c0_i32_0 = arith.constant 0 : i32
    %c0_i32_1 = arith.constant 0 : i32
    return %c0_i32, %c0_i32_0 : i32, i32
  }
  func.func @transform_12(%arg0: i32) -> (i32, i32) {
    %c0_i32 = arith.constant 0 : i32
    %c0_i32_0 = arith.constant 0 : i32
    %c0_i32_1 = arith.constant 0 : i32
    return %c0_i32, %c0_i32_0 : i32, i32
  }
  func.func @transform_13(%arg0: i32) -> (i32, i32) {
    %c0_i32 = arith.constant 0 : i32
    %c0_i32_0 = arith.constant 0 : i32
    %c0_i32_1 = arith.constant 0 : i32
    return %c0_i32, %c0_i32_0 : i32, i32
  }
  func.func @transform_14(%arg0: i32) -> (i32, i32) {
    %c0_i32 = arith.constant 0 : i32
    %c0_i32_0 = arith.constant 0 : i32
    %c0_i32_1 = arith.constant 0 : i32
    return %c0_i32, %c0_i32_0 : i32, i32
  }
  func.func @transform_15(%arg0: i32) -> (i32, i32) {
    %c0_i32 = arith.constant 0 : i32
    %c0_i32_0 = arith.constant 0 : i32
    %c0_i32_1 = arith.constant 0 : i32
    return %c0_i32, %c0_i32_0 : i32, i32
  }
  func.func @transform_16(%arg0: i32) -> (i32, i32) {
    %c0_i32 = arith.constant 0 : i32
    %c0_i32_0 = arith.constant 0 : i32
    %c0_i32_1 = arith.constant 0 : i32
    return %c0_i32, %c0_i32_0 : i32, i32
  }
  func.func @transform_17(%arg0: i32) -> (i32, i32) {
    %c0_i32 = arith.constant 0 : i32
    %c0_i32_0 = arith.constant 0 : i32
    return %arg0, %c0_i32 : i32, i32
  }
}

</mosaic_0001>

<bundles_post_ra>
// kernel: qnet_forward.1
= control target key start
LH: loop header
LB: loop body
LE: loop exit
PB: predicated region body
PF: predicated region fallthrough
CT: control target
= control target key end

     0   :  { %vm81_vm0 = vcmask 1043456   ;;  %v877_v1 = vmov 0   ;;  %vm77_vm1 = vcmask 64512   ;;  %v62_v9 = vlaneseq  ;;  %s1146_s1 = inlined_call_operand.vmem [shape: bf16[8,256], index: 1, kind: input, shape index: {}]   ;;  %s1147_s0 = inlined_call_operand.vmem [shape: f32[8,8], index: 0, kind: input, shape index: {}]   ;;  %s1148_s5 = inlined_call_operand.vmem [shape: bf16[256,64], index: 5, kind: input, shape index: {}]   ;;  %s1149_s2 = inlined_call_operand.vmem [shape: f32[1,256], index: 2, kind: input, shape index: {}]   ;;  %s1150_s3 = inlined_call_operand.vmem [shape: f32[1,256], index: 3, kind: input, shape index: {}]   ;;  %s1151_s4 = inlined_call_operand.vmem [shape: f32[1,256], index: 4, kind: input, shape index: {}]   ;;  %s1152_s6 = inlined_call_operand.vmem [shape: f32[1,64], index: 6, kind: input, shape index: {}]   ;;  %s1153_s9 = inlined_call_operand.vmem [shape: bf16[64,64], index: 9, kind: input, shape index: {}]   ;;  %s1154_s7 = inlined_call_operand.vmem [shape: f32[1,64], index: 7, kind: input, shape index: {}]   ;;  %s1155_s8 = inlined_call_operand.vmem [shape: f32[1,64], index: 8, kind: input, shape index: {}]   ;;  %s1156_s10 = inlined_call_operand.vmem [shape: f32[1,64], index: 10, kind: input, shape index: {}]   ;;  %s1157_s13 = inlined_call_operand.vmem [shape: bf16[64,128], index: 13, kind: input, shape index: {}]   ;;  %s1158_s15 = inlined_call_operand.vmem [shape: bf16[128,128], index: 15, kind: input, shape index: {}]   ;;  %s1159_s11 = inlined_call_operand.vmem [shape: f32[1,64], index: 11, kind: input, shape index: {}]   ;;  %s1160_s12 = inlined_call_operand.vmem [shape: f32[1,64], index: 12, kind: input, shape index: {}]   ;;  %s1161_s14 = inlined_call_operand.vmem [shape: f32[1,128], index: 14, kind: input, shape index: {}]   ;;  %s1162_s16 = inlined_call_operand.vmem [shape: f32[1,128], index: 16, kind: input, shape index: {}]   ;;  %s1163_s17 = inlined_call_operand.vmem [shape: f32[8,128], index: 17, kind: output, shape index: {}]  }
   0x1   :  { %1164 = sst [smem:[#allocation2_spill]] %s1146_s1  ;;  %120 = vmatprep.mubr.bf16.mxu0 %v877_v1  ;;  %v839_v7 = vld [vmem:[%s1148_s5 + $0x40] sm:$0xff]   ;;  %v841_v28 = vld [vmem:[%s1148_s5 + $0x48] sm:$0xff]   ;;  %v843_v30 = vld [vmem:[%s1148_s5 + $0x50] sm:$0xff]   ;;  %vm355_vm2 = vcmask 523264   ;;  %vm879_vm3 = vmmov 0  }
   0x2   :  { %1165 = sst [smem:[#allocation3_spill]] %s1147_s0  ;;  %s1166_s26 = sld [smem:[#allocation2_spill]]  ;;  %v840_v8 = vld [vmem:[%s1148_s5] sm:$0xff]   ;;  %749 = vmatprep.subr.bf16.mxu1 %v839_v7  ;;  %v63_v10 = vshrl.u32 %v62_v9, 7  ;;  %v842_v29 = vld [vmem:[%s1148_s5 + $0x8] sm:$0xff]   ;;  %v844_v31 = vld [vmem:[%s1148_s5 + $0x10] sm:$0xff]  }
   0x3   :  { %s1167_s29 = sld [smem:[#allocation3_spill]]  ;;  %750 = vmatpush3.bf16.msra.mxu1 %v840_v8  ;;  %v60_v12 = vld [vmem:[%s1149_s2] sm:$0x3]  ;;  %v845_v32 = vld [vmem:[%s1148_s5 + $0x58] sm:$0xff]   ;;  %v849_v36 = vld [vmem:[%s1148_s5 + $0x68] sm:$0xff]  }
   0x4   :  { %v982_v11 = vsub.s32 0, %v63_v10  ;;  %v987_v13 = vsub.s32 1, %v63_v10  ;;  %751 = vmatprep.subr.bf16.mxu1 %v841_v28  ;;  %v846_v33 = vld [vmem:[%s1148_s5 + $0x18] sm:$0xff]   ;;  %v847_v34 = vld [vmem:[%s1148_s5 + $0x60] sm:$0xff]   ;;  %v850_v37 = vld [vmem:[%s1148_s5 + $0x28] sm:$0xff]  }
   0x5   :  { %v848_v35 = vld [vmem:[%s1148_s5 + $0x20] sm:$0xff]   ;;  %v851_v38 = vld [vmem:[%s1148_s5 + $0x70] sm:$0xff]   ;;  %v853_v40 = vld [vmem:[%s1148_s5 + $0x78] sm:$0xff]  }
   0x6   :  { %v65_v14 = vrot.slane %v60_v12, %v982_v11  ;;  %v69_v15 = vrot.slane %v60_v12, %v987_v13  ;;  %v852_v39 = vld [vmem:[%s1148_s5 + $0x30] sm:$0xff]   ;;  %v854_v41 = vld [vmem:[%s1148_s5 + $0x38] sm:$0xff]   ;;  %v149_v49 = vld [vmem:[%s1150_s3] sm:$0x3] }
   0x7   :  { %752 = vmatpush3.bf16.msra.mxu1 %v842_v29  ;;  %v163_v50 = vld [vmem:[%s1151_s4] sm:$0x3]  ;;  %v154_v53 = vrot.slane %v149_v49, %v982_v11  ;;  %v158_v54 = vrot.slane %v149_v49, %v987_v13  ;;  %v865_v49 = vld [vmem:[%s1158_s15 + $0x10] sm:$0xff]  }
   0x8   :  { %v59_v0 = vld [vmem:[%s1166_s26] sm:$0xff]  ;;  %753 = vmatprep.subr.bf16.mxu1 %v843_v30  ;;  %v168_v57 = vrot.slane %v163_v50, %v982_v11  ;;  %v172_v58 = vrot.slane %v163_v50, %v987_v13  ;;  %v866_v50 = vld [vmem:[%s1158_s15 + $0x18] sm:$0xff]  }
   0x9   :  { %v57_v2 = vld [vmem:[%s1167_s29] sm:$0xff]  ;;  %v704_v3 = vcombine.high %v59_v0, %v59_v0  ;;  %v703_v4 = vcombine.low %v59_v0, %v59_v0 }
   0xa   :  { %v58_v6 = vpack.c.bf16 %v57_v2, %v57_v2  ;;  %v855_v13 = vld [vmem:[%s1153_s9] sm:$0xff]  }
   0xb   :  { %705 = vmatprep.subr.msk.bf16.mxu0 %vm81_vm0, %v704_v3  ;;  %v83_v5 = vsel %vm81_vm0, %v703_v4, 0  ;;  %754 = vmatpush3.bf16.msra.mxu1 %v844_v31  ;;  %v707_v3 = vld [vmem:[%s1152_s6] ss:$0 sm:$0xff] }
   0xc   :  { %89 = vmatpush1.bf16.msra.mxu0 %v83_v5  ;;  %755 = vmatprep.subr.bf16.mxu1 %v845_v32  ;;  %v725_v29 = vld [vmem:[%s1155_s8] ss:$0 sm:$0xff] }
   0xf   :  { %706 = vmatmul.mubr.msk.bf16.vlgmr.msra.gmra.mrb[0].mxu0 %vm77_vm1, %v58_v6  ;;  %756 = vmatpush3.bf16.msra.mxu1 %v846_v33  ;;  %v726_v33 = vld [vmem:[%s1156_s10] ss:$0 sm:$0xff] }
  0x10   :  { %757 = vmatprep.subr.bf16.mxu1 %v847_v34 }
  0x13   :  { %758 = vmatpush3.bf16.msra.mxu1 %v848_v35 }
  0x14   :  { %759 = vmatprep.subr.bf16.mxu1 %v849_v36 }
  0x17   :  { %760 = vmatpush3.bf16.msra.mxu1 %v850_v37 }
  0x18   :  { %761 = vmatprep.subr.bf16.mxu1 %v851_v38 }
  0x1b   :  { %762 = vmatpush3.bf16.msra.mxu1 %v852_v39 }
  0x1c   :  { %763 = vmatprep.subr.bf16.mxu1 %v853_v40 }
  0x1f   :  { %764 = vmatpush3.bf16.msra.mxu1 %v854_v41 }
  0xe2   :  { %v122_v16 = vpop.f32.mrb[0].mxu0 }
  0xe3   :  { %v123_v17 = vadd.f32 %v122_v16, %v65_v14  ;;  %v124_v18 = vpop.f32.mrb[1].mxu0  ;;  %v878_v14 = vmov 0.0   ;;  %v857_v16 = vld [vmem:[%s1153_s9 + $0x10] sm:$0xff]  }
  0xe4   :  { %v125_v19 = vadd.f32 %v124_v18, %v69_v15  ;;  %v126_v20 = vpop.f32.mrb[2].mxu0  ;;  %790 = vmatprep.subr.bf16.mxu0 %v878_v14  ;;  %814 = vmatprep.subr.bf16.mxu1 %v878_v14  ;;  %v856_v15 = vld [vmem:[%s1153_s9 + $0x8] sm:$0xff]  }
  0xe5   :  { %v129_v21 = vmax.f32 %v123_v17, 0.0  ;;  %v127_v22 = vpop.f32.mrb[3].mxu0  ;;  %791 = vmatpush3.bf16.msra.mxu0 %v855_v13  ;;  %v858_v17 = vld [vmem:[%s1153_s9 + $0x18] sm:$0xff]   ;;  %798 = vmatprep.mubr.msk.bf16.mxu0 %vm879_vm3, %v878_v14 }
  0xe6   :  { %v130_v23 = vmax.f32 %v125_v19, 0.0  ;;  %792 = vmatprep.subr.bf16.mxu0 %v878_v14 }
  0xe7   :  { %v135_v25 = vmul.f32 %v129_v21, %v129_v21 }
  0xe8   :  { %v131_v24 = vadd.f32 %v130_v23, %v129_v21  ;;  %v136_v26 = vmul.f32 %v130_v23, %v130_v23 }
  0xe9   :  { %793 = vmatpush3.bf16.msra.mxu0 %v856_v15 }
  0xea   :  { %132 = vadd.xlane.f32.xlu0 %v131_v24  ;;  %v137_v27 = vadd.f32 %v136_v26, %v135_v25  ;;  %794 = vmatprep.subr.bf16.mxu0 %v878_v14 }
  0xed   :  { %795 = vmatpush3.bf16.msra.mxu0 %v857_v16 }
  0xee   :  { %138 = vadd.xlane.f32.xlu0 %v137_v27  ;;  %796 = vmatprep.subr.bf16.mxu0 %v878_v14  ;;  %v724_v27 = vld [vmem:[%s1154_s7] ss:$0 sm:$0xff] }
  0xf1   :  { %797 = vmatpush3.bf16.msra.mxu0 %v858_v17 }
  0xf2   :  { %802 = vmatprep.subr.bf16.mxu0 %v878_v14 }
 0x177   :  { %v133_v42 = vpop.xlane.xlu0 %132 }
 0x178   :  { %v134_v43 = vmul.f32 0.00390625, %v133_v42 }
 0x17a   :  { %v141_v45 = vmul.f32 %v134_v43, %v134_v43  ;;  %v143_v51 = vsub.f32 %v129_v21, %v134_v43  ;;  %v144_v52 = vsub.f32 %v130_v23, %v134_v43  ;;  %v859_v43 = vld [vmem:[%s1157_s13] sm:$0xff]  }
 0x17b   :  { %v139_v44 = vpop.xlane.xlu0 %138 }
 0x17c   :  { %v140_v46 = vmul.f32 0.00390625, %v139_v44  ;;  %v860_v44 = vld [vmem:[%s1157_s13 + $0x8] sm:$0xff]  }
 0x17e   :  { %v142_v47 = vsub.f32 %v140_v46, %v141_v45  ;;  %v861_v45 = vld [vmem:[%s1157_s13 + $0x10] sm:$0xff]   ;;  %v862_v46 = vld [vmem:[%s1157_s13 + $0x18] sm:$0xff]  }
 0x180   :  { %v145_v48 = vadd.f32 1e-05, %v142_v47  ;;  %v863_v47 = vld [vmem:[%s1158_s15] sm:$0xff]  }
 0x182   :  { %871 = vrsqrt.f32 %v145_v48  ;;  %v864_v48 = vld [vmem:[%s1158_s15 + $0x8] sm:$0xff]  }
 0x18c   :  { %v872_v55 = vpop.eup %871 }
 0x18d   :  { %v148_v56 = vmul.f32 %v872_v55, %v144_v52  ;;  %v147_v59 = vmul.f32 %v872_v55, %v143_v51  ;;  %v867_v51 = vld [vmem:[%s1158_s15 + $0x20] sm:$0xff]   ;;  %v868_v52 = vld [vmem:[%s1158_s15 + $0x28] sm:$0xff]  }
 0x18f   :  { %v162_v60 = vmul.f32 %v158_v54, %v148_v56  ;;  %v161_v61 = vmul.f32 %v154_v53, %v147_v59 }
 0x191   :  { %v176_v62 = vadd.f32 %v172_v58, %v162_v60  ;;  %v175_v63 = vadd.f32 %v168_v57, %v161_v61 }
 0x193   :  { %v178_v0 = vpack.c.bf16 %v176_v62, %v176_v62  ;;  %v177_v1 = vpack.c.bf16 %v175_v63, %v175_v63  ;;  %v732_v62 = vld [vmem:[%s1159_s11] ss:$0 sm:$0xff] }
 0x195   :  { %346 = vmatprep.mubr.bf16.mxu1 %v178_v0  ;;  %v733_v0 = vld [vmem:[%s1160_s12] ss:$0 sm:$0xff] }
 0x196   :  { %347 = vmatmul.mubr.bf16.vlgmr.msra.gmra.mrb[0].mxu1 %v177_v1 }
 0x197   :  { %830 = vmatprep.mubr.msk.bf16.mxu1 %vm879_vm3, %v878_v14  ;;  %815 = vmatpush3.bf16.msra.mxu1 %v863_v47 }
 0x198   :  { %816 = vmatprep.subr.bf16.mxu1 %v878_v14 }
 0x19b   :  { %817 = vmatpush3.bf16.msra.mxu1 %v864_v48 }
 0x19c   :  { %818 = vmatprep.subr.bf16.mxu1 %v878_v14 }
 0x19f   :  { %819 = vmatpush3.bf16.msra.mxu1 %v865_v49 }
 0x1a0   :  { %820 = vmatprep.subr.bf16.mxu1 %v878_v14 }
 0x1a3   :  { %821 = vmatpush3.bf16.msra.mxu1 %v866_v50 }
 0x1a4   :  { %822 = vmatprep.subr.bf16.mxu1 %v878_v14 }
 0x1a7   :  { %823 = vmatpush3.bf16.msra.mxu1 %v867_v51 }
 0x1a8   :  { %824 = vmatprep.subr.bf16.mxu1 %v878_v14 }
 0x1ab   :  { %825 = vmatpush3.bf16.msra.mxu1 %v868_v52 }
 0x1ac   :  { %826 = vmatprep.subr.bf16.mxu1 %v878_v14 }
 0x269   :  { %v765_v2 = vpop.f32.mrb[0].mxu1 }
 0x26a   :  { %v766_v4 = vpop.f32.mrb[1].mxu1 }
 0x26b   :  { %v767_v5 = vadd.f32 %v766_v4, %v765_v2  ;;  %v768_v6 = vpop.f32.mrb[2].mxu1  ;;  %v869_v4 = vld [vmem:[%s1158_s15 + $0x30] sm:$0xff]  }
 0x26c   :  { %v769_v7 = vpop.f32.mrb[3].mxu1  ;;  %827 = vmatpush3.bf16.msra.mxu1 %v869_v4  ;;  %v734_v6 = vld [vmem:[%s1161_s14] ss:$0 sm:$0xff] }
 0x26d   :  { %v349_v8 = vadd.f32 %v767_v5, %v707_v3  ;;  %828 = vmatprep.subr.bf16.mxu1 %v878_v14  ;;  %v870_v5 = vld [vmem:[%s1158_s15 + $0x38] sm:$0xff]  }
 0x26f   :  { %v354_v9 = vmax.f32 %v349_v8, 0.0 }
 0x270   :  { %829 = vmatpush3.bf16.msra.mxu1 %v870_v5 }
 0x271   :  { %v356_v10 = vsel %vm355_vm2, %v354_v9, 0.0  ;;  %v360_v11 = vmul.f32 %v354_v9, %v354_v9 }
 0x272   :  { %357 = vadd.xlane.f32.xlu1 %v356_v10 }
 0x273   :  { %v361_v12 = vsel %vm355_vm2, %v360_v11, 0.0 }
 0x276   :  { %362 = vadd.xlane.f32.xlu1 %v361_v12 }
 0x2ff   :  { %v358_v18 = vpop.xlane.xlu1 %357 }
 0x300   :  { %v359_v19 = vmul.f32 0.015625, %v358_v18 }
 0x302   :  { %v365_v21 = vmul.f32 %v359_v19, %v359_v19  ;;  %v367_v25 = vsub.f32 %v354_v9, %v359_v19 }
 0x303   :  { %v363_v20 = vpop.xlane.xlu1 %362 }
 0x304   :  { %v364_v22 = vmul.f32 0.015625, %v363_v20 }
 0x306   :  { %v366_v23 = vsub.f32 %v364_v22, %v365_v21 }
 0x308   :  { %v368_v24 = vadd.f32 1e-05, %v366_v23 }
 0x30a   :  { %873 = vrsqrt.f32 %v368_v24 }
 0x314   :  { %v874_v26 = vpop.eup %873 }
 0x315   :  { %v370_v28 = vmul.f32 %v874_v26, %v367_v25 }
 0x317   :  { %v378_v30 = vmul.f32 %v724_v27, %v370_v28 }
 0x319   :  { %v386_v31 = vadd.f32 %v725_v29, %v378_v30 }
 0x31b   :  { %v387_v32 = vpack.c.bf16 %v386_v31, %v386_v31 }
 0x31d   :  { %799 = vmatmul.mubr.msk.bf16.vlgmr.msra.gmra.mrb[4].mxu0 %vm355_vm2, %v387_v32 }
 0x31e   :  { %810 = vmatprep.mubr.msk.bf16.mxu0 %vm879_vm3, %v878_v14  ;;  %803 = vmatpush3.bf16.msra.mxu0 %v859_v43 }
 0x31f   :  { %804 = vmatprep.subr.bf16.mxu0 %v878_v14 }
 0x322   :  { %805 = vmatpush3.bf16.msra.mxu0 %v860_v44 }
 0x323   :  { %806 = vmatprep.subr.bf16.mxu0 %v878_v14 }
 0x326   :  { %807 = vmatpush3.bf16.msra.mxu0 %v861_v45 }
 0x327   :  { %808 = vmatprep.subr.bf16.mxu0 %v878_v14  ;;  %v740_v14 = vld [vmem:[%s1162_s16] ss:$0 sm:$0xff] }
 0x32a   :  { %809 = vmatpush3.bf16.msra.mxu0 %v862_v46 }
 0x3f0   :  { %v464_v34 = vpop.f32.mrb[4].mxu0 }
 0x3f1   :  { %v465_v35 = vadd.f32 %v726_v33, %v464_v34  ;;  %v800_v36 = vpop.f32.mrb[5].mxu0 }
 0x3f2   :  { %v467_v37 = vpop.f32.mrb[6].mxu0 }
 0x3f3   :  { %v470_v38 = vmax.f32 %v465_v35, 0.0  ;;  %v801_v39 = vpop.f32.mrb[7].mxu0 }
 0x3f5   :  { %v471_v40 = vsel %vm355_vm2, %v470_v38, 0.0  ;;  %v475_v41 = vmul.f32 %v470_v38, %v470_v38 }
 0x3f6   :  { %472 = vadd.xlane.f32.xlu0 %v471_v40 }
 0x3f7   :  { %v476_v42 = vsel %vm355_vm2, %v475_v41, 0.0 }
 0x3f8   :  { %477 = vadd.xlane.f32.xlu1 %v476_v42 }
 0x483   :  { %v473_v53 = vpop.xlane.xlu0 %472 }
 0x484   :  { %v474_v54 = vmul.f32 0.015625, %v473_v53 }
 0x485   :  { %v478_v55 = vpop.xlane.xlu1 %477 }
 0x486   :  { %v480_v56 = vmul.f32 %v474_v54, %v474_v54  ;;  %v479_v57 = vmul.f32 0.015625, %v478_v55  ;;  %v482_v60 = vsub.f32 %v470_v38, %v474_v54 }
 0x488   :  { %v481_v58 = vsub.f32 %v479_v57, %v480_v56 }
 0x48a   :  { %v483_v59 = vadd.f32 1e-05, %v481_v58 }
 0x48c   :  { %875 = vrsqrt.f32 %v483_v59 }
 0x496   :  { %v876_v61 = vpop.eup %875 }
 0x497   :  { %v485_v63 = vmul.f32 %v876_v61, %v482_v60 }
 0x499   :  { %v493_v1 = vmul.f32 %v732_v62, %v485_v63 }
 0x49b   :  { %v501_v2 = vadd.f32 %v733_v0, %v493_v1 }
 0x49d   :  { %v502_v3 = vpack.c.bf16 %v501_v2, %v501_v2 }
 0x49f   :  { %811 = vmatmul.mubr.msk.bf16.vlgmr.msra.gmra.mrb[8].mxu0 %vm355_vm2, %v502_v3 }
 0x572   :  { %v579_v7 = vpop.f32.mrb[8].mxu0 }
 0x573   :  { %v580_v8 = vadd.f32 %v734_v6, %v579_v7  ;;  %v812_v9 = vpop.f32.mrb[9].mxu0 }
 0x574   :  { %v582_v10 = vpop.f32.mrb[10].mxu0 }
 0x575   :  { %v585_v11 = vmax.f32 %v580_v8, 0.0  ;;  %v813_v12 = vpop.f32.mrb[11].mxu0 }
 0x577   :  { %v586_v13 = vpack.c.bf16 %v585_v11, %v585_v11 }
 0x579   :  { %831 = vmatmul.mubr.bf16.vlgmr.msra.gmra.mrb[4].mxu1 %v586_v13 }
 0x64c   :  { %v692_v15 = vpop.f32.mrb[4].mxu1 }
 0x64d   :  { %v693_v16 = vadd.f32 %v740_v14, %v692_v15  ;;  %v832_v17 = vpop.f32.mrb[5].mxu1 }
 0x64e   :  { %v695_v18 = vpop.f32.mrb[6].mxu1 }
 0x64f   :  { %698 = vst [vmem:[%s1163_s17] sm:$0xff] %v693_v16  ;;  %v833_v19 = vpop.f32.mrb[7].mxu1 }

</bundles_post_ra>
